<compile_context>
chip_gen: v5e
topology: v5e:2x2
jax: 0.10.0
libtpu: 0.0.40
codegen_flags: <defaults>
</compile_context>

<pallas_src>
import jax
import jax.numpy as jnp
from jax.experimental import pallas as pl
from jax.experimental.pallas import tpu as pltpu

_FOLD = 8                        # batch chunks stacked on the sublane axis
_LANE = 128                      # TPU vreg lane width
_GRANULE = _FOLD * _LANE         # 1024 batch rows per folded (8,128) brick
_MAX_TILE = 32 * _GRANULE        # 32768 batch rows per grid step (~13 MiB worst-case VMEM)


def _mlp_kernel(x_ref, p_ref, o_ref):
    """One batch tile of the MLP in folded, feature-major layout.

    x_ref : (16, T)  row c   = feature 0 of batch chunk c (c in 0..7)
                     row c+8 = feature 1 of batch chunk c
    p_ref : (32, 32) packed parameters (layout: see _pack_params)
    o_ref : (8, T)   row c   = output of batch chunk c
    """
    p = p_ref[...]
    w2 = p[:, 0:16]          # (32, 16) Linear(16,32) weight, (out, in)
    b2 = p[:, 16:17]         # (32, 1)
    w3 = p[:, 17:18]         # (32, 1)  Linear(32,1) weight as a column
    w1c0 = p[0:16, 18:19]    # (16, 1)  Linear(2,16) weight column for feature 0
    w1c1 = p[0:16, 19:20]    # (16, 1)  Linear(2,16) weight column for feature 1
    b1 = p[0:16, 20:21]      # (16, 1)
    b3 = p[0:1, 21:22]       # (1, 1)

    # Unrolled over the 8 sublane-folded batch chunks; each chunk is an
    # independent (features x T) problem and writes one output row.
    for c in range(_FOLD):
        x0 = x_ref[c:c + 1, :]                       # (1, T) feature 0
        x1 = x_ref[c + _FOLD:c + _FOLD + 1, :]       # (1, T) feature 1

        # Layer 1 (2 -> 16): K=2 would waste the MXU; two broadcast-MACs on
        # the VPU ((16,1)*(1,T) lowers to lane-/sublane-broadcast multiplies).
        h1 = jnp.maximum(w1c0 * x0 + w1c1 * x1 + b1, 0.0)            # (16, T)

        # Layer 2 (16 -> 32): MXU dot, f32 accumulation.
        h2 = jnp.dot(w2, h1, preferred_element_type=jnp.float32)     # (32, T)
        h2 = jnp.maximum(h2 + b2, 0.0)

        # Layer 3 (32 -> 1): VPU mul + sublane (XLU) reduce; an M=1 MXU dot
        # would roughly double MXU busy time for nothing.
        o_ref[c:c + 1, :] = jnp.sum(w3 * h2, axis=0, keepdims=True) + b3


def _pack_params(params):
    """Pack all six tiny operands into one (32, 32) f32 block (one VMEM tile)."""
    blk = jnp.zeros((32, 32), jnp.float32)
    blk = blk.at[:, 0:16].set(params["w2"].astype(jnp.float32))          # (32,16)
    blk = blk.at[:, 16].set(params["b2"].astype(jnp.float32).reshape(32))
    blk = blk.at[:, 17].set(params["w3"].astype(jnp.float32).reshape(32))
    blk = blk.at[0:16, 18:20].set(params["w1"].astype(jnp.float32))      # (16,2)
    blk = blk.at[0:16, 20].set(params["b1"].astype(jnp.float32).reshape(16))
    blk = blk.at[0, 21].set(params["b3"].astype(jnp.float32).reshape(()))
    return blk


def _choose_tiling(n):
    """Pick (num_steps, tile) in batch rows; tile is a multiple of _GRANULE."""
    n_gran = max(1, pl.cdiv(n, _GRANULE))
    steps = pl.cdiv(n_gran, _MAX_TILE // _GRANULE)
    if n_gran >= 16:                 # keep >=2 'parallel' steps for v7x megacore
        steps = max(steps, 2)
    tile_gran = pl.cdiv(n_gran, steps)
    return steps, tile_gran * _GRANULE


def _distance_model_forward_impl(score, params):
    """score: (N, 2) float32 -> (N, 1) float32, matching DistanceModel.forward."""
    n = score.shape[0]
    steps, tile = _choose_tiling(n)
    n_pad = steps * tile
    m = n_pad // _FOLD               # folded lane extent
    t_f = tile // _FOLD              # folded lanes per grid step (multiple of 128)

    # Fold batch onto the sublane axis:
    #   (N,2) -> (2, n_pad) -> (16, m), where row c holds feature 0 of batch
    #   chunk c (rows [c*m, (c+1)*m)) and row c+8 holds feature 1 of chunk c.
    # TODO(synk): this (N,2)->(2,N) transpose is one extra HBM relayout pass;
    # callers that can produce the folded (16, m) layout directly should feed
    # the pallas_call below without it.
    x2n = jnp.zeros((2, n_pad), jnp.float32).at[:, :n].set(
        score.astype(jnp.float32).T)
    x_folded = x2n.reshape(16, m)

    packed = _pack_params(params)

    out_folded = pl.pallas_call(
        _mlp_kernel,
        out_shape=jax.ShapeDtypeStruct((_FOLD, m), jnp.float32),
        grid=(steps,),
        in_specs=[
            pl.BlockSpec((16, t_f), lambda i: (0, i)),   # streamed, fully dense
            pl.BlockSpec((32, 32), lambda i: (0, 0)),    # packed params, VMEM-resident
        ],
        out_specs=pl.BlockSpec((_FOLD, t_f), lambda i: (0, i)),
        compiler_params=pltpu.CompilerParams(
            dimension_semantics=("parallel",),           # megacore-shardable on v7x
            vmem_limit_bytes=32 * 1024 * 1024,           # safe on v5e/v6e/v7x
        ),
    )(x_folded, packed)

    # (8, m) row-major is exactly batch order over n_pad rows: free reshape,
    # then slice off the padded tail (which holds garbage from zero inputs).
    return out_folded.reshape(n_pad, 1)[:n]


distance_model_forward = jax.jit(_distance_model_forward_impl)


def init_params(key):
    """Deterministic synthetic init mirroring nn.Linear (PyTorch (out, in) layout).

    Uniform(-1/sqrt(fan_in), 1/sqrt(fan_in)) for weights and biases, like torch.
    """
    ks = jax.random.split(key, 6)

    def lin(kw, kb, fan_in, fan_out):
        bound = 1.0 / jnp.sqrt(jnp.float32(fan_in))
        w = jax.random.uniform(kw, (fan_out, fan_in), jnp.float32, -bound, bound)
        b = jax.random.uniform(kb, (fan_out,), jnp.float32, -bound, bound)
        return w, b

    w1, b1 = lin(ks[0], ks[1], 2, 16)
    w2, b2 = lin(ks[2], ks[3], 16, 32)
    w3, b3 = lin(ks[4], ks[5], 32, 1)
    return {"w1": w1, "b1": b1, "w2": w2, "b2": b2, "w3": w3, "b3": b3}


def _reference(score, p):
    h1 = jnp.maximum(score @ p["w1"].T + p["b1"], 0.0)
    h2 = jnp.maximum(h1 @ p["w2"].T + p["b2"], 0.0)
    return h2 @ p["w3"].T + p["b3"]


if __name__ == "__main__":
    key = jax.random.PRNGKey(0)
    k_in, k_in2, k_par = jax.random.split(key, 3)
    params = init_params(k_par)

    # Small smoke test matching the module's natural input (batch=8, features=2).
    N = 8
    score = jax.random.normal(k_in, (N, 2), jnp.float32)
    out = jax.block_until_ready(distance_model_forward(score, params))
    ref = _reference(score, params)
    assert out.shape == (N, 1)
    assert jnp.allclose(out, ref, atol=1e-5, rtol=1e-5)

    # Second check exercising the multi-step grid + sublane folding path.
    N2 = 20000
    score2 = jax.random.normal(k_in2, (N2, 2), jnp.float32)
    out2 = jax.block_until_ready(distance_model_forward(score2, params))
    ref2 = _reference(score2, params)
    assert out2.shape == (N2, 1)
    assert jnp.allclose(out2, ref2, atol=1e-5, rtol=1e-5)

    print("KERNEL_OK")
</pallas_src>

<mosaic_0001>
module attributes {stable_mosaic.version = 11 : i64} {
  func.func @_mlp_kernel(%arg0: i32, %arg1: memref<16x128xf32, #tpu.memory_space<vmem>>, %arg2: memref<32x32xf32, #tpu.memory_space<vmem>>, %arg3: memref<8x128xf32, #tpu.memory_space<vmem>>) attributes {dimension_semantics = [#tpu.dimension_semantics<parallel>], iteration_bounds = array<i64: 1>, scalar_prefetch = 0 : i64, scratch_operands = 0 : i64, tpu.core_type = #tpu.core_type<tc>, window_params = [{transform_indices = @transform_0, window_bounds = array<i64: 16, 128>}, {pipeline_mode = #tpu.pipeline_mode<synchronous>, transform_indices = @transform_1, window_bounds = array<i64: 32, 32>}, {transform_indices = @transform_2, window_bounds = array<i64: 8, 128>}]} {
    %c0 = arith.constant 0 : index
    %c0_0 = arith.constant 0 : index
    %0 = vector.load %arg2[%c0, %c0_0] : memref<32x32xf32, #tpu.memory_space<vmem>>, vector<32x32xf32>
    %1 = vector.extract_strided_slice %0 {offsets = [0, 0], sizes = [32, 16], strides = [1, 1]} : vector<32x32xf32> to vector<32x16xf32>
    %2 = vector.extract_strided_slice %0 {offsets = [0, 16], sizes = [32, 1], strides = [1, 1]} : vector<32x32xf32> to vector<32x1xf32>
    %3 = vector.extract_strided_slice %0 {offsets = [0, 17], sizes = [32, 1], strides = [1, 1]} : vector<32x32xf32> to vector<32x1xf32>
    %4 = vector.extract_strided_slice %0 {offsets = [0, 18], sizes = [16, 1], strides = [1, 1]} : vector<32x32xf32> to vector<16x1xf32>
    %5 = vector.extract_strided_slice %0 {offsets = [0, 19], sizes = [16, 1], strides = [1, 1]} : vector<32x32xf32> to vector<16x1xf32>
    %6 = vector.extract_strided_slice %0 {offsets = [0, 20], sizes = [16, 1], strides = [1, 1]} : vector<32x32xf32> to vector<16x1xf32>
    %7 = vector.extract_strided_slice %0 {offsets = [0, 21], sizes = [1, 1], strides = [1, 1]} : vector<32x32xf32> to vector<1x1xf32>
    %c0_1 = arith.constant 0 : index
    %c0_2 = arith.constant 0 : index
    %8 = vector.load %arg1[%c0_1, %c0_2] : memref<16x128xf32, #tpu.memory_space<vmem>>, vector<1x128xf32>
    %c8 = arith.constant 8 : index
    %c0_3 = arith.constant 0 : index
    %9 = vector.load %arg1[%c8, %c0_3] : memref<16x128xf32, #tpu.memory_space<vmem>>, vector<1x128xf32>
    %10 = vector.broadcast %4 : vector<16x1xf32> to vector<16x128xf32>
    %11 = vector.broadcast %8 : vector<1x128xf32> to vector<16x128xf32>
    %12 = arith.mulf %10, %11 : vector<16x128xf32>
    %13 = vector.broadcast %5 : vector<16x1xf32> to vector<16x128xf32>
    %14 = vector.broadcast %9 : vector<1x128xf32> to vector<16x128xf32>
    %15 = arith.mulf %13, %14 : vector<16x128xf32>
    %16 = arith.addf %12, %15 : vector<16x128xf32>
    %17 = vector.broadcast %6 : vector<16x1xf32> to vector<16x128xf32>
    %18 = arith.addf %16, %17 : vector<16x128xf32>
    %cst = arith.constant 0.000000e+00 : f32
    %19 = vector.broadcast %cst : f32 to vector<16x128xf32>
    %20 = arith.maximumf %18, %19 : vector<16x128xf32>
    %cst_4 = arith.constant dense<0.000000e+00> : vector<32x128xf32>
    %21 = tpu.matmul %1, %20, %cst_4 {dimension_numbers = #tpu.dot_dimension_numbers<[1], [0], [0], [1], [0, 0, 1, 1], [], []>} : vector<32x16xf32>, vector<16x128xf32>, vector<32x128xf32> -> vector<32x128xf32>
    %22 = vector.broadcast %2 : vector<32x1xf32> to vector<32x128xf32>
    %23 = arith.addf %21, %22 : vector<32x128xf32>
    %cst_5 = arith.constant 0.000000e+00 : f32
    %24 = vector.broadcast %cst_5 : f32 to vector<32x128xf32>
    %25 = arith.maximumf %23, %24 : vector<32x128xf32>
    %26 = vector.broadcast %3 : vector<32x1xf32> to vector<32x128xf32>
    %27 = arith.mulf %26, %25 : vector<32x128xf32>
    %cst_6 = arith.constant dense<0.000000e+00> : vector<128xf32>
    %28 = vector.multi_reduction <add>, %27, %cst_6 [0] : vector<32x128xf32> to vector<128xf32>
    %29 = vector.shape_cast %28 : vector<128xf32> to vector<1x128xf32>
    %30 = vector.broadcast %7 : vector<1x1xf32> to vector<1x128xf32>
    %31 = arith.addf %29, %30 : vector<1x128xf32>
    %c0_7 = arith.constant 0 : index
    %c0_8 = arith.constant 0 : index
    %32 = vector.load %arg3[%c0_7, %c0_8] : memref<8x128xf32, #tpu.memory_space<vmem>>, vector<1x128xf32>
    tpu.vector_store %arg3[%c0_7, %c0_8], %31 {strides = array<i32>} : memref<8x128xf32, #tpu.memory_space<vmem>>, vector<1x128xf32>,
    %c1 = arith.constant 1 : index
    %c0_9 = arith.constant 0 : index
    %33 = vector.load %arg1[%c1, %c0_9] : memref<16x128xf32, #tpu.memory_space<vmem>>, vector<1x128xf32>
    %c9 = arith.constant 9 : index
    %c0_10 = arith.constant 0 : index
    %34 = vector.load %arg1[%c9, %c0_10] : memref<16x128xf32, #tpu.memory_space<vmem>>, vector<1x128xf32>
    %35 = vector.broadcast %4 : vector<16x1xf32> to vector<16x128xf32>
    %36 = vector.broadcast %33 : vector<1x128xf32> to vector<16x128xf32>
    %37 = arith.mulf %35, %36 : vector<16x128xf32>
    %38 = vector.broadcast %5 : vector<16x1xf32> to vector<16x128xf32>
    %39 = vector.broadcast %34 : vector<1x128xf32> to vector<16x128xf32>
    %40 = arith.mulf %38, %39 : vector<16x128xf32>
    %41 = arith.addf %37, %40 : vector<16x128xf32>
    %42 = vector.broadcast %6 : vector<16x1xf32> to vector<16x128xf32>
    %43 = arith.addf %41, %42 : vector<16x128xf32>
    %cst_11 = arith.constant 0.000000e+00 : f32
    %44 = vector.broadcast %cst_11 : f32 to vector<16x128xf32>
    %45 = arith.maximumf %43, %44 : vector<16x128xf32>
    %cst_12 = arith.constant dense<0.000000e+00> : vector<32x128xf32>
    %46 = tpu.matmul %1, %45, %cst_12 {dimension_numbers = #tpu.dot_dimension_numbers<[1], [0], [0], [1], [0, 0, 1, 1], [], []>} : vector<32x16xf32>, vector<16x128xf32>, vector<32x128xf32> -> vector<32x128xf32>
    %47 = vector.broadcast %2 : vector<32x1xf32> to vector<32x128xf32>
    %48 = arith.addf %46, %47 : vector<32x128xf32>
    %cst_13 = arith.constant 0.000000e+00 : f32
    %49 = vector.broadcast %cst_13 : f32 to vector<32x128xf32>
    %50 = arith.maximumf %48, %49 : vector<32x128xf32>
    %51 = vector.broadcast %3 : vector<32x1xf32> to vector<32x128xf32>
    %52 = arith.mulf %51, %50 : vector<32x128xf32>
    %cst_14 = arith.constant dense<0.000000e+00> : vector<128xf32>
    %53 = vector.multi_reduction <add>, %52, %cst_14 [0] : vector<32x128xf32> to vector<128xf32>
    %54 = vector.shape_cast %53 : vector<128xf32> to vector<1x128xf32>
    %55 = vector.broadcast %7 : vector<1x1xf32> to vector<1x128xf32>
    %56 = arith.addf %54, %55 : vector<1x128xf32>
    %c1_15 = arith.constant 1 : index
    %c0_16 = arith.constant 0 : index
    %57 = vector.load %arg3[%c1_15, %c0_16] : memref<8x128xf32, #tpu.memory_space<vmem>>, vector<1x128xf32>
    tpu.vector_store %arg3[%c1_15, %c0_16], %56 {strides = array<i32>} : memref<8x128xf32, #tpu.memory_space<vmem>>, vector<1x128xf32>,
    %c2 = arith.constant 2 : index
    %c0_17 = arith.constant 0 : index
    %58 = vector.load %arg1[%c2, %c0_17] : memref<16x128xf32, #tpu.memory_space<vmem>>, vector<1x128xf32>
    %c10 = arith.constant 10 : index
    %c0_18 = arith.constant 0 : index
    %59 = vector.load %arg1[%c10, %c0_18] : memref<16x128xf32, #tpu.memory_space<vmem>>, vector<1x128xf32>
    %60 = vector.broadcast %4 : vector<16x1xf32> to vector<16x128xf32>
    %61 = vector.broadcast %58 : vector<1x128xf32> to vector<16x128xf32>
    %62 = arith.mulf %60, %61 : vector<16x128xf32>
    %63 = vector.broadcast %5 : vector<16x1xf32> to vector<16x128xf32>
    %64 = vector.broadcast %59 : vector<1x128xf32> to vector<16x128xf32>
    %65 = arith.mulf %63, %64 : vector<16x128xf32>
    %66 = arith.addf %62, %65 : vector<16x128xf32>
    %67 = vector.broadcast %6 : vector<16x1xf32> to vector<16x128xf32>
    %68 = arith.addf %66, %67 : vector<16x128xf32>
    %cst_19 = arith.constant 0.000000e+00 : f32
    %69 = vector.broadcast %cst_19 : f32 to vector<16x128xf32>
    %70 = arith.maximumf %68, %69 : vector<16x128xf32>
    %cst_20 = arith.constant dense<0.000000e+00> : vector<32x128xf32>
    %71 = tpu.matmul %1, %70, %cst_20 {dimension_numbers = #tpu.dot_dimension_numbers<[1], [0], [0], [1], [0, 0, 1, 1], [], []>} : vector<32x16xf32>, vector<16x128xf32>, vector<32x128xf32> -> vector<32x128xf32>
    %72 = vector.broadcast %2 : vector<32x1xf32> to vector<32x128xf32>
    %73 = arith.addf %71, %72 : vector<32x128xf32>
    %cst_21 = arith.constant 0.000000e+00 : f32
    %74 = vector.broadcast %cst_21 : f32 to vector<32x128xf32>
    %75 = arith.maximumf %73, %74 : vector<32x128xf32>
    %76 = vector.broadcast %3 : vector<32x1xf32> to vector<32x128xf32>
    %77 = arith.mulf %76, %75 : vector<32x128xf32>
    %cst_22 = arith.constant dense<0.000000e+00> : vector<128xf32>
    %78 = vector.multi_reduction <add>, %77, %cst_22 [0] : vector<32x128xf32> to vector<128xf32>
    %79 = vector.shape_cast %78 : vector<128xf32> to vector<1x128xf32>
    %80 = vector.broadcast %7 : vector<1x1xf32> to vector<1x128xf32>
    %81 = arith.addf %79, %80 : vector<1x128xf32>
    %c2_23 = arith.constant 2 : index
    %c0_24 = arith.constant 0 : index
    %82 = vector.load %arg3[%c2_23, %c0_24] : memref<8x128xf32, #tpu.memory_space<vmem>>, vector<1x128xf32>
    tpu.vector_store %arg3[%c2_23, %c0_24], %81 {strides = array<i32>} : memref<8x128xf32, #tpu.memory_space<vmem>>, vector<1x128xf32>,
    %c3 = arith.constant 3 : index
    %c0_25 = arith.constant 0 : index
    %83 = vector.load %arg1[%c3, %c0_25] : memref<16x128xf32, #tpu.memory_space<vmem>>, vector<1x128xf32>
    %c11 = arith.constant 11 : index
    %c0_26 = arith.constant 0 : index
    %84 = vector.load %arg1[%c11, %c0_26] : memref<16x128xf32, #tpu.memory_space<vmem>>, vector<1x128xf32>
    %85 = vector.broadcast %4 : vector<16x1xf32> to vector<16x128xf32>
    %86 = vector.broadcast %83 : vector<1x128xf32> to vector<16x128xf32>
    %87 = arith.mulf %85, %86 : vector<16x128xf32>
    %88 = vector.broadcast %5 : vector<16x1xf32> to vector<16x128xf32>
    %89 = vector.broadcast %84 : vector<1x128xf32> to vector<16x128xf32>
    %90 = arith.mulf %88, %89 : vector<16x128xf32>
    %91 = arith.addf %87, %90 : vector<16x128xf32>
    %92 = vector.broadcast %6 : vector<16x1xf32> to vector<16x128xf32>
    %93 = arith.addf %91, %92 : vector<16x128xf32>
    %cst_27 = arith.constant 0.000000e+00 : f32
    %94 = vector.broadcast %cst_27 : f32 to vector<16x128xf32>
    %95 = arith.maximumf %93, %94 : vector<16x128xf32>
    %cst_28 = arith.constant dense<0.000000e+00> : vector<32x128xf32>
    %96 = tpu.matmul %1, %95, %cst_28 {dimension_numbers = #tpu.dot_dimension_numbers<[1], [0], [0], [1], [0, 0, 1, 1], [], []>} : vector<32x16xf32>, vector<16x128xf32>, vector<32x128xf32> -> vector<32x128xf32>
    %97 = vector.broadcast %2 : vector<32x1xf32> to vector<32x128xf32>
    %98 = arith.addf %96, %97 : vector<32x128xf32>
    %cst_29 = arith.constant 0.000000e+00 : f32
    %99 = vector.broadcast %cst_29 : f32 to vector<32x128xf32>
    %100 = arith.maximumf %98, %99 : vector<32x128xf32>
    %101 = vector.broadcast %3 : vector<32x1xf32> to vector<32x128xf32>
    %102 = arith.mulf %101, %100 : vector<32x128xf32>
    %cst_30 = arith.constant dense<0.000000e+00> : vector<128xf32>
    %103 = vector.multi_reduction <add>, %102, %cst_30 [0] : vector<32x128xf32> to vector<128xf32>
    %104 = vector.shape_cast %103 : vector<128xf32> to vector<1x128xf32>
    %105 = vector.broadcast %7 : vector<1x1xf32> to vector<1x128xf32>
    %106 = arith.addf %104, %105 : vector<1x128xf32>
    %c3_31 = arith.constant 3 : index
    %c0_32 = arith.constant 0 : index
    %107 = vector.load %arg3[%c3_31, %c0_32] : memref<8x128xf32, #tpu.memory_space<vmem>>, vector<1x128xf32>
    tpu.vector_store %arg3[%c3_31, %c0_32], %106 {strides = array<i32>} : memref<8x128xf32, #tpu.memory_space<vmem>>, vector<1x128xf32>,
    %c4 = arith.constant 4 : index
    %c0_33 = arith.constant 0 : index
    %108 = vector.load %arg1[%c4, %c0_33] : memref<16x128xf32, #tpu.memory_space<vmem>>, vector<1x128xf32>
    %c12 = arith.constant 12 : index
    %c0_34 = arith.constant 0 : index
    %109 = vector.load %arg1[%c12, %c0_34] : memref<16x128xf32, #tpu.memory_space<vmem>>, vector<1x128xf32>
    %110 = vector.broadcast %4 : vector<16x1xf32> to vector<16x128xf32>
    %111 = vector.broadcast %108 : vector<1x128xf32> to vector<16x128xf32>
    %112 = arith.mulf %110, %111 : vector<16x128xf32>
    %113 = vector.broadcast %5 : vector<16x1xf32> to vector<16x128xf32>
    %114 = vector.broadcast %109 : vector<1x128xf32> to vector<16x128xf32>
    %115 = arith.mulf %113, %114 : vector<16x128xf32>
    %116 = arith.addf %112, %115 : vector<16x128xf32>
    %117 = vector.broadcast %6 : vector<16x1xf32> to vector<16x128xf32>
    %118 = arith.addf %116, %117 : vector<16x128xf32>
    %cst_35 = arith.constant 0.000000e+00 : f32
    %119 = vector.broadcast %cst_35 : f32 to vector<16x128xf32>
    %120 = arith.maximumf %118, %119 : vector<16x128xf32>
    %cst_36 = arith.constant dense<0.000000e+00> : vector<32x128xf32>
    %121 = tpu.matmul %1, %120, %cst_36 {dimension_numbers = #tpu.dot_dimension_numbers<[1], [0], [0], [1], [0, 0, 1, 1], [], []>} : vector<32x16xf32>, vector<16x128xf32>, vector<32x128xf32> -> vector<32x128xf32>
    %122 = vector.broadcast %2 : vector<32x1xf32> to vector<32x128xf32>
    %123 = arith.addf %121, %122 : vector<32x128xf32>
    %cst_37 = arith.constant 0.000000e+00 : f32
    %124 = vector.broadcast %cst_37 : f32 to vector<32x128xf32>
    %125 = arith.maximumf %123, %124 : vector<32x128xf32>
    %126 = vector.broadcast %3 : vector<32x1xf32> to vector<32x128xf32>
    %127 = arith.mulf %126, %125 : vector<32x128xf32>
    %cst_38 = arith.constant dense<0.000000e+00> : vector<128xf32>
    %128 = vector.multi_reduction <add>, %127, %cst_38 [0] : vector<32x128xf32> to vector<128xf32>
    %129 = vector.shape_cast %128 : vector<128xf32> to vector<1x128xf32>
    %130 = vector.broadcast %7 : vector<1x1xf32> to vector<1x128xf32>
    %131 = arith.addf %129, %130 : vector<1x128xf32>
    %c4_39 = arith.constant 4 : index
    %c0_40 = arith.constant 0 : index
    %132 = vector.load %arg3[%c4_39, %c0_40] : memref<8x128xf32, #tpu.memory_space<vmem>>, vector<1x128xf32>
    tpu.vector_store %arg3[%c4_39, %c0_40], %131 {strides = array<i32>} : memref<8x128xf32, #tpu.memory_space<vmem>>, vector<1x128xf32>,
    %c5 = arith.constant 5 : index
    %c0_41 = arith.constant 0 : index
    %133 = vector.load %arg1[%c5, %c0_41] : memref<16x128xf32, #tpu.memory_space<vmem>>, vector<1x128xf32>
    %c13 = arith.constant 13 : index
    %c0_42 = arith.constant 0 : index
    %134 = vector.load %arg1[%c13, %c0_42] : memref<16x128xf32, #tpu.memory_space<vmem>>, vector<1x128xf32>
    %135 = vector.broadcast %4 : vector<16x1xf32> to vector<16x128xf32>
    %136 = vector.broadcast %133 : vector<1x128xf32> to vector<16x128xf32>
    %137 = arith.mulf %135, %136 : vector<16x128xf32>
    %138 = vector.broadcast %5 : vector<16x1xf32> to vector<16x128xf32>
    %139 = vector.broadcast %134 : vector<1x128xf32> to vector<16x128xf32>
    %140 = arith.mulf %138, %139 : vector<16x128xf32>
    %141 = arith.addf %137, %140 : vector<16x128xf32>
    %142 = vector.broadcast %6 : vector<16x1xf32> to vector<16x128xf32>
    %143 = arith.addf %141, %142 : vector<16x128xf32>
    %cst_43 = arith.constant 0.000000e+00 : f32
    %144 = vector.broadcast %cst_43 : f32 to vector<16x128xf32>
    %145 = arith.maximumf %143, %144 : vector<16x128xf32>
    %cst_44 = arith.constant dense<0.000000e+00> : vector<32x128xf32>
    %146 = tpu.matmul %1, %145, %cst_44 {dimension_numbers = #tpu.dot_dimension_numbers<[1], [0], [0], [1], [0, 0, 1, 1], [], []>} : vector<32x16xf32>, vector<16x128xf32>, vector<32x128xf32> -> vector<32x128xf32>
    %147 = vector.broadcast %2 : vector<32x1xf32> to vector<32x128xf32>
    %148 = arith.addf %146, %147 : vector<32x128xf32>
    %cst_45 = arith.constant 0.000000e+00 : f32
    %149 = vector.broadcast %cst_45 : f32 to vector<32x128xf32>
    %150 = arith.maximumf %148, %149 : vector<32x128xf32>
    %151 = vector.broadcast %3 : vector<32x1xf32> to vector<32x128xf32>
    %152 = arith.mulf %151, %150 : vector<32x128xf32>
    %cst_46 = arith.constant dense<0.000000e+00> : vector<128xf32>
    %153 = vector.multi_reduction <add>, %152, %cst_46 [0] : vector<32x128xf32> to vector<128xf32>
    %154 = vector.shape_cast %153 : vector<128xf32> to vector<1x128xf32>
    %155 = vector.broadcast %7 : vector<1x1xf32> to vector<1x128xf32>
    %156 = arith.addf %154, %155 : vector<1x128xf32>
    %c5_47 = arith.constant 5 : index
    %c0_48 = arith.constant 0 : index
    %157 = vector.load %arg3[%c5_47, %c0_48] : memref<8x128xf32, #tpu.memory_space<vmem>>, vector<1x128xf32>
    tpu.vector_store %arg3[%c5_47, %c0_48], %156 {strides = array<i32>} : memref<8x128xf32, #tpu.memory_space<vmem>>, vector<1x128xf32>,
    %c6 = arith.constant 6 : index
    %c0_49 = arith.constant 0 : index
    %158 = vector.load %arg1[%c6, %c0_49] : memref<16x128xf32, #tpu.memory_space<vmem>>, vector<1x128xf32>
    %c14 = arith.constant 14 : index
    %c0_50 = arith.constant 0 : index
    %159 = vector.load %arg1[%c14, %c0_50] : memref<16x128xf32, #tpu.memory_space<vmem>>, vector<1x128xf32>
    %160 = vector.broadcast %4 : vector<16x1xf32> to vector<16x128xf32>
    %161 = vector.broadcast %158 : vector<1x128xf32> to vector<16x128xf32>
    %162 = arith.mulf %160, %161 : vector<16x128xf32>
    %163 = vector.broadcast %5 : vector<16x1xf32> to vector<16x128xf32>
    %164 = vector.broadcast %159 : vector<1x128xf32> to vector<16x128xf32>
    %165 = arith.mulf %163, %164 : vector<16x128xf32>
    %166 = arith.addf %162, %165 : vector<16x128xf32>
    %167 = vector.broadcast %6 : vector<16x1xf32> to vector<16x128xf32>
    %168 = arith.addf %166, %167 : vector<16x128xf32>
    %cst_51 = arith.constant 0.000000e+00 : f32
    %169 = vector.broadcast %cst_51 : f32 to vector<16x128xf32>
    %170 = arith.maximumf %168, %169 : vector<16x128xf32>
    %cst_52 = arith.constant dense<0.000000e+00> : vector<32x128xf32>
    %171 = tpu.matmul %1, %170, %cst_52 {dimension_numbers = #tpu.dot_dimension_numbers<[1], [0], [0], [1], [0, 0, 1, 1], [], []>} : vector<32x16xf32>, vector<16x128xf32>, vector<32x128xf32> -> vector<32x128xf32>
    %172 = vector.broadcast %2 : vector<32x1xf32> to vector<32x128xf32>
    %173 = arith.addf %171, %172 : vector<32x128xf32>
    %cst_53 = arith.constant 0.000000e+00 : f32
    %174 = vector.broadcast %cst_53 : f32 to vector<32x128xf32>
    %175 = arith.maximumf %173, %174 : vector<32x128xf32>
    %176 = vector.broadcast %3 : vector<32x1xf32> to vector<32x128xf32>
    %177 = arith.mulf %176, %175 : vector<32x128xf32>
    %cst_54 = arith.constant dense<0.000000e+00> : vector<128xf32>
    %178 = vector.multi_reduction <add>, %177, %cst_54 [0] : vector<32x128xf32> to vector<128xf32>
    %179 = vector.shape_cast %178 : vector<128xf32> to vector<1x128xf32>
    %180 = vector.broadcast %7 : vector<1x1xf32> to vector<1x128xf32>
    %181 = arith.addf %179, %180 : vector<1x128xf32>
    %c6_55 = arith.constant 6 : index
    %c0_56 = arith.constant 0 : index
    %182 = vector.load %arg3[%c6_55, %c0_56] : memref<8x128xf32, #tpu.memory_space<vmem>>, vector<1x128xf32>
    tpu.vector_store %arg3[%c6_55, %c0_56], %181 {strides = array<i32>} : memref<8x128xf32, #tpu.memory_space<vmem>>, vector<1x128xf32>,
    %c7 = arith.constant 7 : index
    %c0_57 = arith.constant 0 : index
    %183 = vector.load %arg1[%c7, %c0_57] : memref<16x128xf32, #tpu.memory_space<vmem>>, vector<1x128xf32>
    %c15 = arith.constant 15 : index
    %c0_58 = arith.constant 0 : index
    %184 = vector.load %arg1[%c15, %c0_58] : memref<16x128xf32, #tpu.memory_space<vmem>>, vector<1x128xf32>
    %185 = vector.broadcast %4 : vector<16x1xf32> to vector<16x128xf32>
    %186 = vector.broadcast %183 : vector<1x128xf32> to vector<16x128xf32>
    %187 = arith.mulf %185, %186 : vector<16x128xf32>
    %188 = vector.broadcast %5 : vector<16x1xf32> to vector<16x128xf32>
    %189 = vector.broadcast %184 : vector<1x128xf32> to vector<16x128xf32>
    %190 = arith.mulf %188, %189 : vector<16x128xf32>
    %191 = arith.addf %187, %190 : vector<16x128xf32>
    %192 = vector.broadcast %6 : vector<16x1xf32> to vector<16x128xf32>
    %193 = arith.addf %191, %192 : vector<16x128xf32>
    %cst_59 = arith.constant 0.000000e+00 : f32
    %194 = vector.broadcast %cst_59 : f32 to vector<16x128xf32>
    %195 = arith.maximumf %193, %194 : vector<16x128xf32>
    %cst_60 = arith.constant dense<0.000000e+00> : vector<32x128xf32>
    %196 = tpu.matmul %1, %195, %cst_60 {dimension_numbers = #tpu.dot_dimension_numbers<[1], [0], [0], [1], [0, 0, 1, 1], [], []>} : vector<32x16xf32>, vector<16x128xf32>, vector<32x128xf32> -> vector<32x128xf32>
    %197 = vector.broadcast %2 : vector<32x1xf32> to vector<32x128xf32>
    %198 = arith.addf %196, %197 : vector<32x128xf32>
    %cst_61 = arith.constant 0.000000e+00 : f32
    %199 = vector.broadcast %cst_61 : f32 to vector<32x128xf32>
    %200 = arith.maximumf %198, %199 : vector<32x128xf32>
    %201 = vector.broadcast %3 : vector<32x1xf32> to vector<32x128xf32>
    %202 = arith.mulf %201, %200 : vector<32x128xf32>
    %cst_62 = arith.constant dense<0.000000e+00> : vector<128xf32>
    %203 = vector.multi_reduction <add>, %202, %cst_62 [0] : vector<32x128xf32> to vector<128xf32>
    %204 = vector.shape_cast %203 : vector<128xf32> to vector<1x128xf32>
    %205 = vector.broadcast %7 : vector<1x1xf32> to vector<1x128xf32>
    %206 = arith.addf %204, %205 : vector<1x128xf32>
    %c7_63 = arith.constant 7 : index
    %c0_64 = arith.constant 0 : index
    %207 = vector.load %arg3[%c7_63, %c0_64] : memref<8x128xf32, #tpu.memory_space<vmem>>, vector<1x128xf32>
    tpu.vector_store %arg3[%c7_63, %c0_64], %206 {strides = array<i32>} : memref<8x128xf32, #tpu.memory_space<vmem>>, vector<1x128xf32>,
    return
  }
  func.func @transform_0(%arg0: i32) -> (i32, i32) {
    %c0_i32 = arith.constant 0 : i32
    %c0_i32_0 = arith.constant 0 : i32
    return %c0_i32, %arg0 : i32, i32
  }
  func.func @transform_1(%arg0: i32) -> (i32, i32) {
    %c0_i32 = arith.constant 0 : i32
    %c0_i32_0 = arith.constant 0 : i32
    %c0_i32_1 = arith.constant 0 : i32
    return %c0_i32, %c0_i32_0 : i32, i32
  }
  func.func @transform_2(%arg0: i32) -> (i32, i32) {
    %c0_i32 = arith.constant 0 : i32
    %c0_i32_0 = arith.constant 0 : i32
    return %c0_i32, %arg0 : i32, i32
  }
}

</mosaic_0001>

<bundles_post_ra>
// kernel: _distance_model_forward_impl.1
= control target key start
LH: loop header
LB: loop body
LE: loop exit
PB: predicated region body
PF: predicated region fallthrough
CT: control target
= control target key end

     0   :  { %v655_v0 = vmov 18   ;;  %v656_v3 = vmov 20   ;;  %v657_v4 = vmov 19   ;;  %v658_v22 = vmov 16   ;;  %s1005_s1 = inlined_call_operand.vmem [shape: f32[32,32], index: 1, kind: input, shape index: {}]   ;;  %s1006_s0 = inlined_call_operand.vmem [shape: f32[16,128], index: 0, kind: input, shape index: {}]   ;;  %s1007_s2 = inlined_call_operand.vmem [shape: f32[8,128], index: 2, kind: output, shape index: {}]  }
   0x1   :  { %628 = vset.pattern.permute.xlu1 %v655_v0  ;;  %626 = vset.pattern.permute.xlu0 %v655_v0  ;;  %v679_v1 = vld [vmem:[%s1005_s1 + $0x8] sm:$0xff]  ;;  %v684_v2 = vld [vmem:[%s1005_s1] sm:$0xff]  ;;  %v743_v23 = vld [vmem:[%s1005_s1 + $0x10] sm:$0xff]  ;;  %vm73_vm0 = vcmask 130048  }
   0x2   :  { %24 = vperm.xlu0 %626, %v679_v1   ;;  %19 = vperm.xlu1 %628, %v684_v2   ;;  %v639_v7 = vld [vmem:[%s1006_s0] ss:$0 sm:$0xff]  ;;  %v641_v8 = vld [vmem:[%s1006_s0 + $0x1] ss:$0 sm:$0xff]  ;;  %v643_v9 = vld [vmem:[%s1006_s0 + $0x2] ss:$0 sm:$0xff] }
   0x3   :  { %630 = vset.pattern.permute.xlu2 %v656_v3  ;;  %v645_v10 = vld [vmem:[%s1006_s0 + $0x3] ss:$0 sm:$0xff]  ;;  %v709_v11 = vld [vmem:[%s1006_s0 + $0x4] ss:$0 sm:$0xff]  ;;  %v716_v13 = vld [vmem:[%s1006_s0 + $0x5] ss:$0 sm:$0xff] }
   0x4   :  { %48 = vperm.xlu2 %630, %v679_v1   ;;  %v721_v14 = vld [vmem:[%s1006_s0 + $0x6] ss:$0 sm:$0xff]  ;;  %v726_v15 = vld [vmem:[%s1006_s0 + $0x7] ss:$0 sm:$0xff]  ;;  %v640_v16 = vld [vmem:[%s1006_s0 + $0x8] ss:$0 sm:$0xff] }
   0x5   :  { %v642_v17 = vld [vmem:[%s1006_s0 + $0x9] ss:$0 sm:$0xff]  ;;  %v644_v20 = vld [vmem:[%s1006_s0 + $0xa] ss:$0 sm:$0xff]  ;;  %v646_v21 = vld [vmem:[%s1006_s0 + $0xb] ss:$0 sm:$0xff] }
   0x6   :  { %v773_v48 = vld [vmem:[%s1005_s1 + $0x18] sm:$0xff]  ;;  %v648_v58 = vld [vmem:[%s1006_s0 + $0xc] ss:$0 sm:$0xff]  ;;  %v650_v59 = vld [vmem:[%s1006_s0 + $0xd] ss:$0 sm:$0xff] }
   0x7   :  { %v652_v60 = vld [vmem:[%s1006_s0 + $0xe] ss:$0 sm:$0xff]  ;;  %v654_v3 = vld [vmem:[%s1006_s0 + $0xf] ss:$0 sm:$0xff] }
   0xa   :  { %627 = vset.pattern.permute.xlu0 %v657_v4  ;;  %629 = vset.pattern.permute.xlu1 %v657_v4 }
   0xb   :  { %35 = vperm.xlu0 %627, %v679_v1   ;;  %31 = vperm.xlu1 %629, %v684_v2  }
   0xc   :  { %44 = vperm.xlu2 %630, %v684_v2  }
  0x13   :  { %631 = vset.pattern.permute.xlu1 %v658_v22  ;;  %633 = vset.pattern.permute.xlu0 %v658_v22 }
  0x14   :  { %56 = vperm.xlu1 %631, %v684_v2   ;;  %65 = vperm.xlu0 %633, %v743_v23  }
  0x15   :  { %632 = vset.pattern.permute.xlu2 %v658_v22 }
  0x16   :  { %60 = vperm.xlu2 %632, %v679_v1  }
  0x1c   :  { %70 = vperm.xlu1 %631, %v773_v48  }
  0x5e   :  { %v711_v12 = vpop.permute.xlu2 %48 }
  0x66   :  { %v775_v53 = vpop.permute.xlu2 %44 }
  0x74   :  { %v25_v5 = vpop.permute.xlu0 %24  ;;  %v692_v6 = vpop.permute.xlu1 %19 }
  0x75   :  { %v29_v18 = vmul.f32 %v639_v7, %v25_v5  ;;  %v154_v19 = vmul.f32 %v641_v8, %v25_v5  ;;  %v216_v24 = vmul.f32 %v643_v9, %v25_v5  ;;  %v278_v25 = vmul.f32 %v645_v10, %v25_v5 }
  0x76   :  { %v28_v26 = vmul.f32 %v639_v7, %v692_v6  ;;  %v153_v27 = vmul.f32 %v641_v8, %v692_v6  ;;  %v215_v28 = vmul.f32 %v643_v9, %v692_v6  ;;  %v277_v29 = vmul.f32 %v645_v10, %v692_v6 }
  0x77   :  { %v752_v30 = vmul.f32 %v709_v11, %v25_v5  ;;  %v757_v33 = vmul.f32 %v716_v13, %v25_v5  ;;  %v760_v34 = vmul.f32 %v721_v14, %v25_v5  ;;  %v763_v35 = vmul.f32 %v726_v15, %v25_v5 }
  0x78   :  { %v659_v9 = vmov 17  }
  0x79   :  { %636 = vset.pattern.permute.xlu0 %v659_v9  ;;  %634 = vset.pattern.permute.xlu2 %v659_v9 }
  0x7a   :  { %128 = vperm.xlu0 %636, %v773_v48   ;;  %635 = vset.pattern.permute.xlu1 %v659_v9 }
  0x7b   :  { %116 = vperm.xlu2 %634, %v684_v2   ;;  %120 = vperm.xlu1 %635, %v679_v1  }
  0x7d   :  { %v36_v31 = vpop.permute.xlu0 %35  ;;  %v754_v32 = vpop.permute.xlu1 %31 }
  0x7e   :  { %v40_v36 = vmul.f32 %v640_v16, %v36_v31  ;;  %v157_v37 = vmul.f32 %v642_v17, %v36_v31  ;;  %v219_v38 = vmul.f32 %v644_v20, %v36_v31  ;;  %v281_v39 = vmul.f32 %v646_v21, %v36_v31 }
  0x7f   :  { %v39_v40 = vmul.f32 %v640_v16, %v754_v32  ;;  %v156_v41 = vmul.f32 %v642_v17, %v754_v32  ;;  %v218_v42 = vmul.f32 %v644_v20, %v754_v32  ;;  %v280_v43 = vmul.f32 %v646_v21, %v754_v32 }
  0x80   :  { %v42_v44 = vadd.f32 %v40_v36, %v29_v18  ;;  %v159_v45 = vadd.f32 %v157_v37, %v154_v19  ;;  %v221_v46 = vadd.f32 %v219_v38, %v216_v24  ;;  %v283_v47 = vadd.f32 %v281_v39, %v278_v25 }
  0x81   :  { %v41_v49 = vadd.f32 %v39_v40, %v28_v26  ;;  %v158_v50 = vadd.f32 %v156_v41, %v153_v27  ;;  %v220_v51 = vadd.f32 %v218_v42, %v215_v28  ;;  %v282_v52 = vadd.f32 %v280_v43, %v277_v29 }
  0x82   :  { %v52_v54 = vadd.f32 %v711_v12, %v42_v44  ;;  %v161_v55 = vadd.f32 %v159_v45, %v711_v12  ;;  %v223_v56 = vadd.f32 %v221_v46, %v711_v12  ;;  %v285_v57 = vadd.f32 %v283_v47, %v711_v12 }
  0x83   :  { %v51_v61 = vadd.f32 %v775_v53, %v41_v49  ;;  %v160_v62 = vadd.f32 %v158_v50, %v775_v53  ;;  %v222_v63 = vadd.f32 %v220_v51, %v775_v53  ;;  %v284_v0 = vadd.f32 %v282_v52, %v775_v53  ;;  %124 = vperm.xlu2 %634, %v743_v23  }
  0x84   :  { %v54_v4 = vmax.f32 %v52_v54, 0.0  ;;  %v163_v5 = vmax.f32 %v161_v55, 0.0  ;;  %v225_v7 = vmax.f32 %v223_v56, 0.0  ;;  %v287_v8 = vmax.f32 %v285_v57, 0.0 }
  0x85   :  { %v53_v10 = vmax.f32 %v51_v61, 0.0  ;;  %v162_v16 = vmax.f32 %v160_v62, 0.0  ;;  %v339_v17 = vmul.f32 %v709_v11, %v692_v6  ;;  %v401_v18 = vmul.f32 %v716_v13, %v692_v6 }
  0x86   :  { %96 = vmatpush.msra.mxu0 %v54_v4  ;;  %178 = vmatpush.msra.mxu1 %v163_v5  ;;  %v224_v19 = vmax.f32 %v222_v63, 0.0  ;;  %v343_v20 = vmul.f32 %v648_v58, %v36_v31  ;;  %v405_v21 = vmul.f32 %v650_v59, %v36_v31  ;;  %v467_v22 = vmul.f32 %v652_v60, %v36_v31 }
  0x87   :  { %240 = vmatpush.msra.mxu2 %v225_v7  ;;  %302 = vmatpush.msra.mxu3 %v287_v8  ;;  %v286_v24 = vmax.f32 %v284_v0, 0.0  ;;  %v529_v25 = vmul.f32 %v654_v3, %v36_v31  ;;  %v342_v26 = vmul.f32 %v648_v58, %v754_v32  ;;  %v404_v11 = vmul.f32 %v650_v59, %v754_v32  ;;  %v899_v59 = vpop.permute.xlu0 %65 }
  0x88   :  { %97 = vmatpush.msra.mxu0 %v53_v10  ;;  %179 = vmatpush.msra.mxu1 %v162_v16  ;;  %v345_v13 = vadd.f32 %v343_v20, %v752_v30  ;;  %v407_v27 = vadd.f32 %v405_v21, %v757_v33  ;;  %v469_v28 = vadd.f32 %v467_v22, %v760_v34 }
  0x89   :  { %241 = vmatpush.msra.mxu2 %v224_v19  ;;  %303 = vmatpush.msra.mxu3 %v286_v24  ;;  %v531_v29 = vadd.f32 %v529_v25, %v763_v35  ;;  %v344_v36 = vadd.f32 %v342_v26, %v339_v17  ;;  %v406_v37 = vadd.f32 %v404_v11, %v401_v18 }
  0x8a   :  { %588 = vmatmul.msk.f32.vlgmr.msra.gmra.mxu0 %vm73_vm0, %v684_v2  ;;  %592 = vmatmul.msk.f32.vlgmr.msra.gmra.mxu1 %vm73_vm0, %v684_v2  ;;  %v347_v31 = vadd.f32 %v345_v13, %v711_v12  ;;  %v409_v30 = vadd.f32 %v407_v27, %v711_v12  ;;  %v471_v33 = vadd.f32 %v469_v28, %v711_v12 }
  0x8b   :  { %596 = vmatmul.msk.f32.vlgmr.msra.gmra.mxu2 %vm73_vm0, %v684_v2  ;;  %600 = vmatmul.msk.f32.vlgmr.msra.gmra.mxu3 %vm73_vm0, %v684_v2  ;;  %v533_v34 = vadd.f32 %v531_v29, %v711_v12  ;;  %v346_v35 = vadd.f32 %v344_v36, %v775_v53  ;;  %v408_v38 = vadd.f32 %v406_v37, %v775_v53 }
  0x8c   :  { %v349_v39 = vmax.f32 %v347_v31, 0.0  ;;  %v411_v40 = vmax.f32 %v409_v30, 0.0  ;;  %v463_v41 = vmul.f32 %v721_v14, %v692_v6  ;;  %v466_v42 = vmul.f32 %v652_v60, %v754_v32 }
  0x8d   :  { %v473_v43 = vmax.f32 %v471_v33, 0.0  ;;  %v535_v44 = vmax.f32 %v533_v34, 0.0  ;;  %v525_v45 = vmul.f32 %v726_v15, %v692_v6  ;;  %v528_v12 = vmul.f32 %v654_v3, %v754_v32 }
  0x8e   :  { %364 = vmatpush.msrb.mxu0 %v349_v39  ;;  %426 = vmatpush.msrb.mxu1 %v411_v40  ;;  %v348_v46 = vmax.f32 %v346_v35, 0.0  ;;  %v410_v47 = vmax.f32 %v408_v38, 0.0  ;;  %v468_v49 = vadd.f32 %v466_v42, %v463_v41  ;;  %v660_v15 = vmov 21  }
  0x8f   :  { %488 = vmatpush.msrb.mxu2 %v473_v43  ;;  %550 = vmatpush.msrb.mxu3 %v535_v44  ;;  %v530_v14 = vadd.f32 %v528_v12, %v525_v45 }
  0x90   :  { %365 = vmatpush.msrb.mxu0 %v348_v46  ;;  %427 = vmatpush.msrb.mxu1 %v410_v47  ;;  %v470_v50 = vadd.f32 %v468_v49, %v775_v53 }
  0x91   :  { %v532_v51 = vadd.f32 %v530_v14, %v775_v53  ;;  %637 = vset.pattern.permute.xlu1 %v660_v15  ;;  %638 = vset.pattern.permute.xlu0 %v660_v15  ;;  %v893_v53 = vpop.permute.xlu2 %60 }
  0x92   :  { %v472_v52 = vmax.f32 %v470_v50, 0.0  ;;  %589 = vmatmul.msk.f32.gmra.mxu0 %vm73_vm0, %v679_v1  ;;  %593 = vmatmul.msk.f32.gmra.mxu1 %vm73_vm0, %v679_v1 }
  0x93   :  { %v534_v6 = vmax.f32 %v532_v51, 0.0  ;;  %597 = vmatmul.msk.f32.gmra.mxu2 %vm73_vm0, %v679_v1  ;;  %601 = vmatmul.msk.f32.gmra.mxu3 %vm73_vm0, %v679_v1 }
  0x94   :  { %489 = vmatpush.msrb.mxu2 %v472_v52  ;;  %145 = vperm.xlu1 %637, %v684_v2  }
  0x95   :  { %551 = vmatpush.msrb.mxu3 %v534_v6 }
  0x9a   :  { %590 = vmatmul.msk.f32.gmra.mxu0 %vm73_vm0, %v743_v23  ;;  %594 = vmatmul.msk.f32.gmra.mxu1 %vm73_vm0, %v743_v23 }
  0x9b   :  { %598 = vmatmul.msk.f32.gmra.mxu2 %vm73_vm0, %v743_v23  ;;  %602 = vmatmul.msk.f32.gmra.mxu3 %vm73_vm0, %v743_v23 }
  0xa2   :  { %591 = vmatmul.msk.f32.gmra.mxu0 %vm73_vm0, %v773_v48  ;;  %595 = vmatmul.msk.f32.gmra.mxu1 %vm73_vm0, %v773_v48 }
  0xa3   :  { %599 = vmatmul.msk.f32.gmra.mxu2 %vm73_vm0, %v773_v48  ;;  %603 = vmatmul.msk.f32.gmra.mxu3 %vm73_vm0, %v773_v48 }
  0xaa   :  { %604 = vmatmul.msk.f32.vlgmr.msrb.gmra.mxu0 %vm73_vm0, %v684_v2  ;;  %608 = vmatmul.msk.f32.vlgmr.msrb.gmra.mxu1 %vm73_vm0, %v684_v2 }
  0xab   :  { %612 = vmatmul.msk.f32.vlgmr.msrb.gmra.mxu2 %vm73_vm0, %v684_v2  ;;  %616 = vmatmul.msk.f32.vlgmr.msrb.gmra.mxu3 %vm73_vm0, %v684_v2 }
  0xb2   :  { %605 = vmatmul.msk.f32.gmra.mxu0 %vm73_vm0, %v679_v1  ;;  %609 = vmatmul.msk.f32.gmra.mxu1 %vm73_vm0, %v679_v1 }
  0xb3   :  { %613 = vmatmul.msk.f32.gmra.mxu2 %vm73_vm0, %v679_v1  ;;  %617 = vmatmul.msk.f32.gmra.mxu3 %vm73_vm0, %v679_v1  ;;  %v891_v1 = vpop.permute.xlu1 %56 }
  0xba   :  { %606 = vmatmul.msk.f32.gmra.mxu0 %vm73_vm0, %v743_v23  ;;  %610 = vmatmul.msk.f32.gmra.mxu1 %vm73_vm0, %v743_v23 }
  0xbb   :  { %614 = vmatmul.msk.f32.gmra.mxu2 %vm73_vm0, %v743_v23  ;;  %618 = vmatmul.msk.f32.gmra.mxu3 %vm73_vm0, %v743_v23  ;;  %v895_v57 = vpop.permute.xlu1 %70 }
  0xc2   :  { %607 = vmatmul.msk.f32.gmra.mxu0 %vm73_vm0, %v773_v48  ;;  %611 = vmatmul.msk.f32.gmra.mxu1 %vm73_vm0, %v773_v48 }
  0xc3   :  { %615 = vmatmul.msk.f32.gmra.mxu2 %vm73_vm0, %v773_v48  ;;  %619 = vmatmul.msk.f32.gmra.mxu3 %vm73_vm0, %v773_v48 }
  0xd5   :  { %v897_v58 = vpop.permute.xlu2 %116 }
  0xdd   :  { %v913_v25 = vpop.permute.xlu2 %124 }
  0xec   :  { %v925_v43 = vpop.permute.xlu0 %128 }
  0xed   :  { %v907_v17 = vpop.permute.xlu1 %120 }
 0x107   :  { %v99_v2 = vpop.f32.mrf.mxu0  ;;  %v181_v32 = vpop.f32.mrf.mxu1 }
 0x108   :  { %v100_v63 = vadd.f32 %v99_v2, %v891_v1  ;;  %v182_v0 = vadd.f32 %v181_v32, %v891_v1 }
 0x10a   :  { %v111_v10 = vmax.f32 %v100_v63, 0.0  ;;  %v193_v16 = vmax.f32 %v182_v0, 0.0 }
 0x10c   :  { %v131_v28 = vmul.f32 %v897_v58, %v111_v10  ;;  %v197_v29 = vmul.f32 %v193_v16, %v897_v58 }
 0x10e   :  { %v243_v54 = vpop.f32.mrf.mxu2  ;;  %v305_v23 = vpop.f32.mrf.mxu3 }
 0x10f   :  { %v102_v55 = vpop.f32.mrf.mxu0  ;;  %v184_v56 = vpop.f32.mrf.mxu1  ;;  %v244_v20 = vadd.f32 %v243_v54, %v891_v1  ;;  %v306_v21 = vadd.f32 %v305_v23, %v891_v1 }
 0x110   :  { %v103_v60 = vadd.f32 %v102_v55, %v893_v53  ;;  %v185_v48 = vadd.f32 %v184_v56, %v893_v53 }
 0x111   :  { %v255_v39 = vmax.f32 %v244_v20, 0.0  ;;  %v317_v40 = vmax.f32 %v306_v21, 0.0 }
 0x112   :  { %v112_v8 = vmax.f32 %v103_v60, 0.0  ;;  %v194_v9 = vmax.f32 %v185_v48, 0.0 }
 0x113   :  { %v259_v2 = vmul.f32 %v255_v39, %v897_v58  ;;  %v321_v32 = vmul.f32 %v317_v40, %v897_v58  ;;  %v939_v39 = vpop.permute.xlu1 %145 }
 0x114   :  { %v132_v26 = vmul.f32 %v907_v17, %v112_v8  ;;  %v198_v11 = vmul.f32 %v194_v9, %v907_v17 }
 0x116   :  { %v246_v61 = vpop.f32.mrf.mxu2  ;;  %v308_v62 = vpop.f32.mrf.mxu3  ;;  %v135_v44 = vadd.f32 %v132_v26, %v131_v28  ;;  %v201_v45 = vadd.f32 %v198_v11, %v197_v29 }
 0x117   :  { %v105_v3 = vpop.f32.mrf.mxu0  ;;  %v187_v4 = vpop.f32.mrf.mxu1  ;;  %v247_v22 = vadd.f32 %v246_v61, %v893_v53  ;;  %v309_v24 = vadd.f32 %v308_v62, %v893_v53 }
 0x118   :  { %v106_v5 = vadd.f32 %v105_v3, %v899_v59  ;;  %v188_v7 = vadd.f32 %v187_v4, %v899_v59 }
 0x119   :  { %v256_v41 = vmax.f32 %v247_v22, 0.0  ;;  %v318_v42 = vmax.f32 %v309_v24, 0.0 }
 0x11a   :  { %v113_v18 = vmax.f32 %v106_v5, 0.0  ;;  %v195_v19 = vmax.f32 %v188_v7, 0.0 }
 0x11b   :  { %v260_v6 = vmul.f32 %v256_v41, %v907_v17  ;;  %v322_v15 = vmul.f32 %v318_v42, %v907_v17 }
 0x11c   :  { %v133_v33 = vmul.f32 %v913_v25, %v113_v18  ;;  %v199_v34 = vmul.f32 %v195_v19, %v913_v25 }
 0x11d   :  { %v263_v5 = vadd.f32 %v260_v6, %v259_v2  ;;  %v325_v7 = vadd.f32 %v322_v15, %v321_v32 }
 0x11e   :  { %v249_v13 = vpop.f32.mrf.mxu2  ;;  %v311_v27 = vpop.f32.mrf.mxu3  ;;  %v136_v14 = vadd.f32 %v135_v44, %v133_v33  ;;  %v202_v50 = vadd.f32 %v201_v45, %v199_v34 }
 0x11f   :  { %v250_v36 = vadd.f32 %v249_v13, %v899_v59  ;;  %v312_v37 = vadd.f32 %v311_v27, %v899_v59  ;;  %v108_v31 = vpop.f32.mrf.mxu0  ;;  %v190_v30 = vpop.f32.mrf.mxu1 }
 0x120   :  { %v109_v35 = vadd.f32 %v108_v31, %v895_v57  ;;  %v191_v38 = vadd.f32 %v190_v30, %v895_v57 }
 0x121   :  { %v257_v47 = vmax.f32 %v250_v36, 0.0  ;;  %v319_v49 = vmax.f32 %v312_v37, 0.0 }
 0x122   :  { %v114_v12 = vmax.f32 %v109_v35, 0.0  ;;  %v196_v46 = vmax.f32 %v191_v38, 0.0 }
 0x123   :  { %v261_v60 = vmul.f32 %v257_v47, %v913_v25  ;;  %v323_v48 = vmul.f32 %v319_v49, %v913_v25 }
 0x124   :  { %v134_v51 = vmul.f32 %v925_v43, %v114_v12  ;;  %v200_v52 = vmul.f32 %v196_v46, %v925_v43 }
 0x125   :  { %v264_v18 = vadd.f32 %v263_v5, %v261_v60  ;;  %v326_v19 = vadd.f32 %v325_v7, %v323_v48 }
 0x126   :  { %v137_v54 = vadd.f32 %v136_v14, %v134_v51  ;;  %v203_v23 = vadd.f32 %v202_v50, %v200_v52  ;;  %v252_v55 = vpop.f32.mrf.mxu2  ;;  %v314_v56 = vpop.f32.mrf.mxu3 }
 0x127   :  { %v253_v61 = vadd.f32 %v252_v55, %v895_v57  ;;  %v315_v62 = vadd.f32 %v314_v56, %v895_v57  ;;  %v367_v63 = vpop.f32.mrf.mxu0  ;;  %v429_v0 = vpop.f32.mrf.mxu1 }
 0x128   :  { %v138_v3 = vrot.slane %v137_v54, 4  ;;  %v204_v4 = vrot.slane %v203_v23, 4  ;;  %v368_v15 = vadd.f32 %v367_v63, %v891_v1  ;;  %v430_v2 = vadd.f32 %v429_v0, %v891_v1 }
 0x129   :  { %v258_v8 = vmax.f32 %v253_v61, 0.0  ;;  %v320_v9 = vmax.f32 %v315_v62, 0.0 }
 0x12a   :  { %v139_v10 = vadd.f32 %v138_v3, %v137_v54  ;;  %v205_v16 = vadd.f32 %v204_v4, %v203_v23  ;;  %v379_v62 = vmax.f32 %v368_v15, 0.0  ;;  %v441_v3 = vmax.f32 %v430_v2, 0.0 }
 0x12b   :  { %v262_v20 = vmul.f32 %v258_v8, %v925_v43  ;;  %v324_v21 = vmul.f32 %v320_v9, %v925_v43 }
 0x12c   :  { %v140_v22 = vrot.slane %v139_v10, 2  ;;  %v206_v24 = vrot.slane %v205_v16, 2 }
 0x12d   :  { %v265_v26 = vadd.f32 %v264_v18, %v262_v20  ;;  %v327_v11 = vadd.f32 %v326_v19, %v324_v21  ;;  %v445_v21 = vmul.f32 %v441_v3, %v897_v58 }
 0x12e   :  { %v491_v13 = vpop.f32.mrf.mxu2  ;;  %v553_v27 = vpop.f32.mrf.mxu3  ;;  %v141_v28 = vadd.f32 %v140_v22, %v139_v10  ;;  %v207_v29 = vadd.f32 %v206_v24, %v205_v16 }
 0x12f   :  { %v266_v36 = vrot.slane %v265_v26, 4  ;;  %v328_v37 = vrot.slane %v327_v11, 4  ;;  %v370_v31 = vpop.f32.mrf.mxu0  ;;  %v432_v30 = vpop.f32.mrf.mxu1  ;;  %v492_v7 = vadd.f32 %v491_v13, %v891_v1  ;;  %v554_v8 = vadd.f32 %v553_v27, %v891_v1 }
 0x130   :  { %v142_v33 = vrot.slane %v141_v28, 1  ;;  %v208_v34 = vrot.slane %v207_v29, 1  ;;  %v371_v49 = vadd.f32 %v370_v31, %v893_v53  ;;  %v433_v14 = vadd.f32 %v432_v30, %v893_v53 }
 0x131   :  { %v267_v35 = vadd.f32 %v266_v36, %v265_v26  ;;  %v329_v38 = vadd.f32 %v328_v37, %v327_v11  ;;  %v383_v1 = vmul.f32 %v379_v62, %v897_v58  ;;  %v565_v36 = vmax.f32 %v554_v8, 0.0 }
 0x132   :  { %v143_v40 = vadd.f32 %v142_v33, %v141_v28  ;;  %v209_v41 = vadd.f32 %v208_v34, %v207_v29  ;;  %v380_v48 = vmax.f32 %v371_v49, 0.0  ;;  %v442_v61 = vmax.f32 %v433_v14, 0.0 }
 0x133   :  { %v268_v42 = vrot.slane %v267_v35, 2  ;;  %v330_v44 = vrot.slane %v329_v38, 2  ;;  %v503_v29 = vmax.f32 %v492_v7, 0.0 }
 0x134   :  { %v148_v45 = vadd.f32 %v939_v39, %v143_v40  ;;  %v210_v12 = vadd.f32 %v209_v41, %v939_v39  ;;  %v384_v16 = vmul.f32 %v380_v48, %v907_v17  ;;  %v446_v18 = vmul.f32 %v442_v61, %v907_v17 }
 0x135   :  { %v269_v46 = vadd.f32 %v268_v42, %v267_v35  ;;  %v331_v47 = vadd.f32 %v330_v44, %v329_v38 }
 0x136   :  { %149 = vst [vmem:[%s1007_s2] sm:$0x1] %v148_v45  ;;  %v494_v50 = vpop.f32.mrf.mxu2  ;;  %v556_v51 = vpop.f32.mrf.mxu3  ;;  %v387_v30 = vadd.f32 %v384_v16, %v383_v1  ;;  %v449_v33 = vadd.f32 %v446_v18, %v445_v21 }
 0x137   :  { %v270_v52 = vrot.slane %v269_v46, 1  ;;  %v332_v6 = vrot.slane %v331_v47, 1  ;;  %211 = vst [vmem:[%s1007_s2 + $0x1] sm:$0x1] %v210_v12  ;;  %v373_v32 = vpop.f32.mrf.mxu0  ;;  %v435_v54 = vpop.f32.mrf.mxu1  ;;  %v495_v9 = vadd.f32 %v494_v50, %v893_v53  ;;  %v557_v10 = vadd.f32 %v556_v51, %v893_v53 }
 0x138   :  { %v374_v23 = vadd.f32 %v373_v32, %v899_v59  ;;  %v436_v55 = vadd.f32 %v435_v54, %v899_v59 }
 0x139   :  { %v271_v56 = vadd.f32 %v270_v52, %v269_v46  ;;  %v333_v60 = vadd.f32 %v332_v6, %v331_v47  ;;  %v504_v37 = vmax.f32 %v495_v9, 0.0  ;;  %v566_v31 = vmax.f32 %v557_v10, 0.0 }
 0x13a   :  { %v381_v4 = vmax.f32 %v374_v23, 0.0  ;;  %v443_v5 = vmax.f32 %v436_v55, 0.0  ;;  %v507_v46 = vmul.f32 %v503_v29, %v897_v58  ;;  %v569_v47 = vmul.f32 %v565_v36, %v897_v58 }
 0x13b   :  { %v272_v63 = vadd.f32 %v271_v56, %v939_v39  ;;  %v334_v0 = vadd.f32 %v333_v60, %v939_v39  ;;  %v508_v45 = vmul.f32 %v504_v37, %v907_v17  ;;  %v570_v12 = vmul.f32 %v566_v31, %v907_v17 }
 0x13c   :  { %v385_v11 = vmul.f32 %v381_v4, %v913_v25  ;;  %v447_v13 = vmul.f32 %v443_v5, %v913_v25 }
 0x13d   :  { %273 = vst [vmem:[%s1007_s2 + $0x2] sm:$0x1] %v272_v63  ;;  %v511_v23 = vadd.f32 %v508_v45, %v507_v46  ;;  %v573_v17 = vadd.f32 %v570_v12, %v569_v47 }
 0x13e   :  { %335 = vst [vmem:[%s1007_s2 + $0x3] sm:$0x1] %v334_v0  ;;  %v497_v19 = vpop.f32.mrf.mxu2  ;;  %v559_v20 = vpop.f32.mrf.mxu3  ;;  %v388_v40 = vadd.f32 %v387_v30, %v385_v11  ;;  %v450_v41 = vadd.f32 %v449_v33, %v447_v13 }
 0x13f   :  { %v498_v22 = vadd.f32 %v497_v19, %v899_v59  ;;  %v560_v24 = vadd.f32 %v559_v20, %v899_v59  ;;  %v376_v26 = vpop.f32.mrf.mxu0  ;;  %v438_v53 = vpop.f32.mrf.mxu1 }
 0x140   :  { %v377_v27 = vadd.f32 %v376_v26, %v895_v57  ;;  %v439_v28 = vadd.f32 %v438_v53, %v895_v57 }
 0x141   :  { %v505_v38 = vmax.f32 %v498_v22, 0.0  ;;  %v567_v59 = vmax.f32 %v560_v24, 0.0 }
 0x142   :  { %v382_v34 = vmax.f32 %v377_v27, 0.0  ;;  %v444_v35 = vmax.f32 %v439_v28, 0.0 }
 0x143   :  { %v509_v52 = vmul.f32 %v505_v38, %v913_v25  ;;  %v571_v6 = vmul.f32 %v567_v59, %v913_v25 }
 0x144   :  { %v386_v42 = vmul.f32 %v382_v34, %v925_v43  ;;  %v448_v44 = vmul.f32 %v444_v35, %v925_v43 }
 0x145   :  { %v512_v48 = vadd.f32 %v511_v23, %v509_v52  ;;  %v574_v61 = vadd.f32 %v573_v17, %v571_v6 }
 0x146   :  { %v389_v49 = vadd.f32 %v388_v40, %v386_v42  ;;  %v451_v14 = vadd.f32 %v450_v41, %v448_v44  ;;  %v500_v50 = vpop.f32.mrf.mxu2  ;;  %v562_v51 = vpop.f32.mrf.mxu3 }
 0x147   :  { %v501_v15 = vadd.f32 %v500_v50, %v895_v57  ;;  %v563_v2 = vadd.f32 %v562_v51, %v895_v57 }
 0x148   :  { %v390_v32 = vrot.slane %v389_v49, 4  ;;  %v452_v54 = vrot.slane %v451_v14, 4 }
 0x149   :  { %v506_v55 = vmax.f32 %v501_v15, 0.0  ;;  %v568_v56 = vmax.f32 %v563_v2, 0.0 }
 0x14a   :  { %v391_v60 = vadd.f32 %v390_v32, %v389_v49  ;;  %v453_v58 = vadd.f32 %v452_v54, %v451_v14 }
 0x14b   :  { %v510_v62 = vmul.f32 %v506_v55, %v925_v43  ;;  %v572_v3 = vmul.f32 %v568_v56, %v925_v43 }
 0x14c   :  { %v392_v63 = vrot.slane %v391_v60, 2  ;;  %v454_v25 = vrot.slane %v453_v58, 2 }
 0x14d   :  { %v513_v0 = vadd.f32 %v512_v48, %v510_v62  ;;  %v575_v4 = vadd.f32 %v574_v61, %v572_v3 }
 0x14e   :  { %v393_v5 = vadd.f32 %v392_v63, %v391_v60  ;;  %v455_v57 = vadd.f32 %v454_v25, %v453_v58 }
 0x14f   :  { %v514_v7 = vrot.slane %v513_v0, 4  ;;  %v576_v8 = vrot.slane %v575_v4, 4 }
 0x150   :  { %v394_v9 = vrot.slane %v393_v5, 1  ;;  %v456_v10 = vrot.slane %v455_v57, 1 }
 0x151   :  { %v515_v16 = vadd.f32 %v514_v7, %v513_v0  ;;  %v577_v18 = vadd.f32 %v576_v8, %v575_v4 }
 0x152   :  { %v395_v19 = vadd.f32 %v394_v9, %v393_v5  ;;  %v457_v20 = vadd.f32 %v456_v10, %v455_v57 }
 0x153   :  { %v516_v1 = vrot.slane %v515_v16, 2  ;;  %v578_v21 = vrot.slane %v577_v18, 2 }
 0x154   :  { %v396_v22 = vadd.f32 %v395_v19, %v939_v39  ;;  %v458_v43 = vadd.f32 %v457_v20, %v939_v39 }
 0x155   :  { %v517_v24 = vadd.f32 %v516_v1, %v515_v16  ;;  %v579_v26 = vadd.f32 %v578_v21, %v577_v18 }
 0x156   :  { %397 = vst [vmem:[%s1007_s2 + $0x4] sm:$0x1] %v396_v22 }
 0x157   :  { %459 = vst [vmem:[%s1007_s2 + $0x5] sm:$0x1] %v458_v43  ;;  %v518_v53 = vrot.slane %v517_v24, 1  ;;  %v580_v11 = vrot.slane %v579_v26, 1 }
 0x159   :  { %v519_v13 = vadd.f32 %v518_v53, %v517_v24  ;;  %v581_v27 = vadd.f32 %v580_v11, %v579_v26 }
 0x15b   :  { %v520_v28 = vadd.f32 %v519_v13, %v939_v39  ;;  %v582_v29 = vadd.f32 %v581_v27, %v939_v39 }
 0x15d   :  { %521 = vst [vmem:[%s1007_s2 + $0x6] sm:$0x1] %v520_v28 }
 0x15e   :  { %583 = vst [vmem:[%s1007_s2 + $0x7] sm:$0x1] %v582_v29 }

</bundles_post_ra>
